<compile_context>
chip_gen: v7x
topology: tpu7x:2x2x1
jax: 0.10.0
libtpu: 0.0.40
codegen_flags: <defaults>
</compile_context>

<pallas_src>
import math

import jax
import jax.numpy as jnp
import numpy as np
from jax.experimental import pallas as pl
from jax.experimental.pallas import tpu as pltpu


# ----------------------------- kernels ------------------------------------ #

def _kernel_enc_resident(x_ref, enc_ref, out_ref):
    # x_ref:   (1, TILE_N, E)      one N-tile of one chunk of one batch elem
    # enc_ref: (1, N, P)           whole Fourier encoding, VMEM-resident
    # out_ref: (1, TILE_N, E + P)
    e = x_ref.shape[-1]
    tile_n = x_ref.shape[1]
    start = pl.multiple_of(pl.program_id(0) * tile_n, tile_n)
    out_ref[:, :, :e] = x_ref[...]
    out_ref[:, :, e:] = enc_ref[:, pl.ds(start, tile_n), :]


def _kernel_enc_tiled(x_ref, enc_ref, out_ref):
    # x_ref:   (1, TILE_N, E)
    # enc_ref: (1, TILE_N, P)      per-tile slice of the Fourier encoding
    # out_ref: (1, TILE_N, E + P)
    e = x_ref.shape[-1]
    out_ref[:, :, :e] = x_ref[...]
    out_ref[:, :, e:] = enc_ref[...]


def _kernel_full(x_ref, enc_ref, out_ref):
    # Fallback when N is not a multiple of 8: whole row dim in one block so the
    # second-minor block dim equals the full array dim (valid layout).
    # x_ref: (1, 3N, E); enc_ref: (1, N, P); out_ref: (1, 3N, E + P)
    e = x_ref.shape[-1]
    n = enc_ref.shape[1]
    out_ref[:, :, :e] = x_ref[...]
    for c in range(3):                       # static slices, unrolled
        out_ref[:, c * n:(c + 1) * n, e:] = enc_ref[...]


# ---------------------------- host helpers --------------------------------- #

def _make_fourier_encoding(input_shape, num_frequency_bands):
    """(N, P) Fourier encoding: [pos, sin(pi*pos_d*f_d), cos(pi*pos_d*f_d)]."""
    n = math.prod(input_shape)
    d = len(input_shape)
    f = num_frequency_bands
    coords = [jnp.linspace(-1.0, 1.0, s) for s in input_shape]
    mesh = jnp.meshgrid(*coords, indexing="ij")
    pos = jnp.stack(mesh, axis=-1).reshape(n, d).astype(jnp.float32)      # (N, D)
    freqs = jnp.stack(
        [jnp.linspace(1.0, s / 2.0, f) for s in input_shape],
        axis=0).astype(jnp.float32)                                       # (D, F)
    g = pos[:, :, None] * freqs[None, :, :]                               # (N, D, F)
    enc = jnp.concatenate(
        [pos,
         jnp.sin(jnp.pi * g).reshape(n, d * f),
         jnp.cos(jnp.pi * g).reshape(n, d * f)],
        axis=-1)                                                          # (N, P)
    return enc


def _largest_tile_rows(n, max_rows):
    """Largest multiple-of-8 divisor of n that is <= max_rows (n % 8 == 0)."""
    cap = min(max_rows, n)
    cap -= cap % 8
    for t in range(cap, 7, -8):
        if n % t == 0:
            return t
    return 8


# ------------------------------ wrapper ------------------------------------ #

def position_encoder(x, input_shape, num_frequency_bands=24):
    """x: (B, 3*N, E) -> (B, 3*N, E + D*(2F+1)); N = prod(input_shape)."""
    b, three_n, e = x.shape
    n = math.prod(input_shape)
    assert three_n == 3 * n, "dim 1 of x must be 3 * prod(input_shape)"
    d = len(input_shape)
    f = num_frequency_bands
    p_ch = d * (2 * f + 1)

    # Precompute once, cast to the output dtype in the wrapper (no in-kernel
    # cast, narrow DMA), and pre-shape for direct kernel stores.
    enc = _make_fourier_encoding(input_shape, f).astype(x.dtype)          # (N, P)
    enc = enc.reshape(1, n, p_ch)                                         # (1, N, P)

    itemsize = jnp.dtype(x.dtype).itemsize
    row_bytes = (2 * e + p_ch) * itemsize       # one x row + one out row
    enc_bytes = n * p_ch * itemsize

    # Generation-aware VMEM working-set budget.
    try:
        vmem_cap = int(pltpu.get_tpu_info().vmem_capacity_bytes)
    except Exception:
        vmem_cap = 64 << 20                     # conservative (v7x-sized) fallback
    budget = int(min(max(vmem_cap // 4, 8 << 20), 32 << 20))
    vmem_ceiling = max(vmem_cap - (8 << 20), 16 << 20)

    out_shape = jax.ShapeDtypeStruct((b, 3 * n, e + p_ch), x.dtype)

    if n % 8 != 0:
        # Rare fallback: N cannot be row-tiled without violating the (8,128)
        # block rule, so process the whole row dim per batch element.
        footprint = 2 * (3 * n * row_bytes) + 2 * enc_bytes
        fn = pl.pallas_call(
            _kernel_full,
            out_shape=out_shape,
            grid_spec=pltpu.PrefetchScalarGridSpec(
                num_scalar_prefetch=0,
                grid=(b,),
                in_specs=[
                    pl.BlockSpec((1, 3 * n, e), lambda bi: (bi, 0, 0)),
                    pl.BlockSpec((1, n, p_ch), lambda bi: (0, 0, 0)),
                ],
                out_specs=pl.BlockSpec((1, 3 * n, e + p_ch),
                                       lambda bi: (bi, 0, 0)),
            ),
            compiler_params=pltpu.CompilerParams(
                dimension_semantics=("parallel",),
                vmem_limit_bytes=int(min(max(footprint + (4 << 20), 16 << 20),
                                         vmem_ceiling))),
        )
        return fn(x, enc)

    # Keep the whole encoding resident when it is small; otherwise stream a
    # per-tile slice (outermost tile axis -> re-DMA only on tile change).
    enc_resident = 2 * enc_bytes <= budget // 2
    if enc_resident:
        rows_cap = max((budget - 2 * enc_bytes) // (2 * row_bytes), 8)
    else:
        rows_cap = max(budget // (2 * (row_bytes + p_ch * itemsize)), 8)
    tile_n = _largest_tile_rows(n, rows_cap)
    nt = n // tile_n

    if enc_resident:
        kernel = _kernel_enc_resident
        enc_spec = pl.BlockSpec((1, n, p_ch), lambda ti, bi, ci: (0, 0, 0))
        footprint = 2 * enc_bytes + 2 * tile_n * row_bytes
    else:
        kernel = _kernel_enc_tiled
        enc_spec = pl.BlockSpec((1, tile_n, p_ch), lambda ti, bi, ci: (0, ti, 0))
        footprint = 2 * tile_n * (row_bytes + p_ch * itemsize)

    vmem_limit = int(min(max(footprint + (4 << 20), 16 << 20), vmem_ceiling))

    fn = pl.pallas_call(
        kernel,
        out_shape=out_shape,
        grid_spec=pltpu.PrefetchScalarGridSpec(
            num_scalar_prefetch=0,
            grid=(nt, b, 3),                     # N-tile axis outermost
            in_specs=[
                pl.BlockSpec((1, tile_n, e),
                             lambda ti, bi, ci: (bi, ci * nt + ti, 0)),
                enc_spec,
            ],
            out_specs=pl.BlockSpec((1, tile_n, e + p_ch),
                                   lambda ti, bi, ci: (bi, ci * nt + ti, 0)),
        ),
        compiler_params=pltpu.CompilerParams(
            dimension_semantics=("parallel", "parallel", "parallel"),
            vmem_limit_bytes=vmem_limit),
    )
    return fn(x, enc)


# ----------------------------- reference ----------------------------------- #

def _reference(x, input_shape, num_frequency_bands):
    """Pure-JAX reference mirroring the PyTorch module semantics."""
    b = x.shape[0]
    enc = _make_fourier_encoding(input_shape, num_frequency_bands)
    enc_b = jnp.broadcast_to(enc[None], (b,) + enc.shape).astype(x.dtype)
    ogm, map_img, flow = jnp.split(x, 3, axis=1)
    ogm = jnp.concatenate([ogm, enc_b], axis=-1)
    map_img = jnp.concatenate([map_img, enc_b], axis=-1)
    flow = jnp.concatenate([flow, enc_b], axis=-1)
    return jnp.concatenate([ogm, map_img, flow], axis=1)


if __name__ == "__main__":
    batch = 2
    input_shape = (8, 8)        # spatial grid -> N = 64
    embed_dim = 32
    num_frequency_bands = 4     # small for the demo; module default is 24

    n = math.prod(input_shape)
    key = jax.random.PRNGKey(0)
    x = jax.random.normal(key, (batch, 3 * n, embed_dim), dtype=jnp.float32)

    out = position_encoder(x, input_shape, num_frequency_bands)
    out = jax.block_until_ready(out)

    ref = _reference(x, input_shape, num_frequency_bands)
    np.testing.assert_allclose(np.asarray(out), np.asarray(ref),
                               rtol=1e-5, atol=1e-5)
    print("KERNEL_OK")
</pallas_src>

<mosaic_0001>
module attributes {stable_mosaic.version = 11 : i64} {
  func.func @_kernel_enc_resident(%arg0: i32, %arg1: i32, %arg2: i32, %arg3: memref<1x64x32xf32, #tpu.memory_space<vmem>>, %arg4: memref<1x64x18xf32, #tpu.memory_space<vmem>>, %arg5: memref<1x64x50xf32, #tpu.memory_space<vmem>>) attributes {dimension_semantics = [#tpu.dimension_semantics<parallel>, #tpu.dimension_semantics<parallel>, #tpu.dimension_semantics<parallel>], iteration_bounds = array<i64: 1, 2, 3>, scalar_prefetch = 0 : i64, scratch_operands = 0 : i64, tpu.core_type = #tpu.core_type<tc>, window_params = [{transform_indices = @transform_0, window_bounds = array<i64: 1, 64, 32>}, {pipeline_mode = #tpu.pipeline_mode<synchronous>, transform_indices = @transform_1, window_bounds = array<i64: 1, 64, 18>}, {transform_indices = @transform_2, window_bounds = array<i64: 1, 64, 50>}]} {
    %c64_i32 = arith.constant 64 : i32
    %0 = arith.muli %arg0, %c64_i32 : i32
    %1 = tpu.assume_multiple %0, 64 : i32
    %c0 = arith.constant 0 : index
    %c0_0 = arith.constant 0 : index
    %c0_1 = arith.constant 0 : index
    %2 = vector.load %arg3[%c0, %c0_0, %c0_1] : memref<1x64x32xf32, #tpu.memory_space<vmem>>, vector<1x64x32xf32>
    %c0_2 = arith.constant 0 : index
    %c0_3 = arith.constant 0 : index
    %c0_4 = arith.constant 0 : index
    %3 = vector.load %arg5[%c0_2, %c0_3, %c0_4] : memref<1x64x50xf32, #tpu.memory_space<vmem>>, vector<1x64x32xf32>
    tpu.vector_store %arg5[%c0_2, %c0_3, %c0_4], %2 {strides = array<i32>} : memref<1x64x50xf32, #tpu.memory_space<vmem>>, vector<1x64x32xf32>,
    %c0_5 = arith.constant 0 : index
    %4 = arith.index_cast %1 : i32 to index
    %c0_6 = arith.constant 0 : index
    %5 = vector.load %arg4[%c0_5, %4, %c0_6] : memref<1x64x18xf32, #tpu.memory_space<vmem>>, vector<1x64x18xf32>
    %c0_7 = arith.constant 0 : index
    %c0_8 = arith.constant 0 : index
    %c32 = arith.constant 32 : index
    %6 = vector.load %arg5[%c0_7, %c0_8, %c32] : memref<1x64x50xf32, #tpu.memory_space<vmem>>, vector<1x64x18xf32>
    tpu.vector_store %arg5[%c0_7, %c0_8, %c32], %5 {strides = array<i32>} : memref<1x64x50xf32, #tpu.memory_space<vmem>>, vector<1x64x18xf32>,
    return
  }
  func.func @transform_0(%arg0: i32, %arg1: i32, %arg2: i32) -> (i32, i32, i32) {
    %c1_i32 = arith.constant 1 : i32
    %0 = arith.muli %arg2, %c1_i32 : i32
    %1 = arith.addi %0, %arg0 : i32
    %c0_i32 = arith.constant 0 : i32
    %c0_i32_0 = arith.constant 0 : i32
    return %arg1, %1, %c0_i32 : i32, i32, i32
  }
  func.func @transform_1(%arg0: i32, %arg1: i32, %arg2: i32) -> (i32, i32, i32) {
    %c0_i32 = arith.constant 0 : i32
    %c0_i32_0 = arith.constant 0 : i32
    %c0_i32_1 = arith.constant 0 : i32
    %c0_i32_2 = arith.constant 0 : i32
    return %c0_i32, %c0_i32_0, %c0_i32_1 : i32, i32, i32
  }
  func.func @transform_2(%arg0: i32, %arg1: i32, %arg2: i32) -> (i32, i32, i32) {
    %c1_i32 = arith.constant 1 : i32
    %0 = arith.muli %arg2, %c1_i32 : i32
    %1 = arith.addi %0, %arg0 : i32
    %c0_i32 = arith.constant 0 : i32
    %c0_i32_0 = arith.constant 0 : i32
    return %arg1, %1, %c0_i32 : i32, i32, i32
  }
}

</mosaic_0001>

<bundles_post_ra>
// kernel: tpu_custom_call.1
= control target key start
LH: loop header
LB: loop body
LE: loop exit
PB: predicated region body
PF: predicated region fallthrough
CT: control target
= control target key end

     0   :  { %s477_s9 = smov 0   ;;  %s479_s10 = smov 0   ;;  %s594_s0 = inlined_call_operand.vmem [shape: f32[2,192,32], index: 0, kind: input, shape index: {}]   ;;  %s595_s1 = inlined_call_operand.vmem [shape: f32[1,64,18], index: 1, kind: input, shape index: {}]   ;;  %s596_s2 = inlined_call_operand.vmem [shape: f32[2,192,50], index: 2, kind: output, shape index: {}]  }
   0x1   :  { %s481_s11 = smov 0   ;;  %s483_s12 = smov 0  }
   0x2   :  { %s485_s13 = smov 0  }
   0x3 LB: > { %s24_s14 = sadd.s32 1, %s451_s11  ;;  %s27_s15 = sadd.s32 1, %s455_s12  ;;  %s459_s13 = sphi %s485_s13, %s12_s13   ;;  %s455_s12 = sphi %s483_s12, %s600_s12   ;;  %s451_s11 = sphi %s481_s11, %s599_s11   ;;  %s447_s10 = sphi %s479_s10, %s598_s10   ;;  %s443_s9 = sphi %s477_s9, %s597_s9  }
   0x4   : > { %p25_p0 = scmp.ge.s32.totalorder %s24_s14, 3  ;;  %p372_p1 = scmp.ge.s32.totalorder %s459_s13, 1 }
   0x5   : > { %p146_p2 = scmp.lt.s32.totalorder %s459_s13, 7 }
   0x6   : > { %s602_s14 = smov (%p25_p0, %s24_s14), 0  ;;  %s604_s15 = smov (!%p25_p0, %s27_s15), %s455_s12 }
   0x7   : > { %p147_p3 = pnand %p372_p1, %p146_p2  ;;  %p29_p4 = scmp.ge.s32.totalorder %s604_s15, 2 }
   0x8   : > { %v223_v0 = vld [vmem:[%s595_s1 + $0x10] sm:$0xff] (!%p147_p3)  ;;  %v221_v1 = vld [vmem:[%s595_s1] sm:$0xff] (!%p147_p3)  ;;  %s373_s20 = sshll.u32 (!%p147_p3), %s443_s9, 3  ;;  %s461_s21 = smov (!%p147_p3), 32   ;;  %v224_v2 = vld [vmem:[%s595_s1 + $0x18] sm:$0xff] (!%p147_p3)  ;;  %vm211_vm0 = vcmask (!%p147_p3), 261120  }
   0x9   : > { %s606_s15 = smov (%p29_p4, %s604_s15), 0  ;;  %150 = sbr.rel (%p147_p3) target bundleno = 141 (0x8d), region = 28 }
   0xa   : > { %241 = vrot.lane.b32.xlu1 (!%p147_p3), %v223_v0, %s461_s21  ;;  %237 = vrot.lane.b32.xlu0 (!%p147_p3), %v221_v1, %s461_s21  ;;  %p180_p5 = scmp.lt.s32.totalorder (!%p147_p3), %s447_s10, 1  ;;  %p182_p6 = scmp.lt.s32.totalorder (!%p147_p3), %s373_s20, 23  ;;  %v222_v3 = vld [vmem:[%s595_s1 + $0x8] sm:$0xff] (!%p147_p3)  ;;  %v225_v5 = vld [vmem:[%s595_s1 + $0x20] sm:$0xff] (!%p147_p3)  ;;  %vm261_vm1 = vcmask (!%p147_p3), 408832  }
   0xb   : > { %v226_v4 = vld [vmem:[%s595_s1 + $0x28] sm:$0xff] (!%p147_p3)  ;;  %v228_v6 = vld [vmem:[%s595_s1 + $0x38] sm:$0xff] (!%p147_p3)  ;;  %v227_v7 = vld [vmem:[%s595_s1 + $0x30] sm:$0xff] (!%p147_p3) }
   0xe   : > { %243 = vrot.lane.b32.xlu1 (!%p147_p3), %v224_v2, %s461_s21  ;;  %239 = vrot.lane.b32.xlu0 (!%p147_p3), %v222_v3, %s461_s21 }
  0x10   : > { %s608_s10 = smov (!%p180_p5, %s447_s10), 1  ;;  %s610_s20 = smov (!%p182_p6, %s373_s20), 23 }
  0x11   : > { %s379_s26 = smul.u32 24, %s608_s10 }
  0x12   : > { %247 = vrot.lane.b32.xlu1 %v226_v4, %s461_s21  ;;  %245 = vrot.lane.b32.xlu0 %v225_v5, %s461_s21 }
  0x13   : > { %s185_s3 = sadd.s32 %s379_s26, %s610_s20 }
  0x14   : > { %s374_s4 = sshll.u32 %s185_s3, 3 }
  0x15   : > { %s187_s16 = scalar_lea.vmem %s594_s0, %s374_s4  ;;  %s543_s19 = scalar_lea.vmem %s596_s2, %s374_s4 }
  0x16   : > { %v205_v8 = vld [vmem:[%s187_s16 + $0x10] sm:$0xff]  ;;  %v203_v9 = vld [vmem:[%s187_s16] sm:$0xff]  ;;  %v206_v10 = vld [vmem:[%s187_s16 + $0x18] sm:$0xff]  ;;  %251 = vrot.lane.b32.xlu1 %v228_v6, %s461_s21 }
  0x17   : > { %214 = vst.msk [vmem:[%s543_s19 + $0x10] sm:$0xff] %vm211_vm0, %v205_v8  ;;  %212 = vst.msk [vmem:[%s543_s19] sm:$0xff] %vm211_vm0, %v203_v9  ;;  %v204_v11 = vld [vmem:[%s187_s16 + $0x8] sm:$0xff]  ;;  %v207_v13 = vld [vmem:[%s187_s16 + $0x20] sm:$0xff] }
  0x18   : > { %215 = vst.msk [vmem:[%s543_s19 + $0x18] sm:$0xff] %vm211_vm0, %v206_v10  ;;  %v208_v12 = vld [vmem:[%s187_s16 + $0x28] sm:$0xff]  ;;  %213 = vst.msk [vmem:[%s543_s19 + $0x8] sm:$0xff] %vm211_vm0, %v204_v11  ;;  %v210_v14 = vld [vmem:[%s187_s16 + $0x38] sm:$0xff] }
  0x19   : > { %217 = vst.msk [vmem:[%s543_s19 + $0x28] sm:$0xff] %vm211_vm0, %v208_v12  ;;  %216 = vst.msk [vmem:[%s543_s19 + $0x20] sm:$0xff] %vm211_vm0, %v207_v13  ;;  %v209_v15 = vld [vmem:[%s187_s16 + $0x30] sm:$0xff]  ;;  %249 = vrot.lane.b32.xlu0 %v227_v7, %s461_s21 }
  0x1a   : > { %219 = vst.msk [vmem:[%s543_s19 + $0x38] sm:$0xff] %vm211_vm0, %v210_v14  ;;  %218 = vst.msk [vmem:[%s543_s19 + $0x30] sm:$0xff] %vm211_vm0, %v209_v15 }
  0x7c   : > { %v242_v16 = vpop.permute.xlu1 %241  ;;  %v238_v17 = vpop.permute.xlu0 %237 }
  0x7d   : > { %264 = vst.msk [vmem:[%s543_s19 + $0x10] sm:$0xff] %vm261_vm1, %v242_v16  ;;  %262 = vst.msk [vmem:[%s543_s19] sm:$0xff] %vm261_vm1, %v238_v17 }
  0x80   : > { %v244_v18 = vpop.permute.xlu1 %243  ;;  %v240_v19 = vpop.permute.xlu0 %239 }
  0x81   : > { %265 = vst.msk [vmem:[%s543_s19 + $0x18] sm:$0xff] %vm261_vm1, %v244_v18  ;;  %263 = vst.msk [vmem:[%s543_s19 + $0x8] sm:$0xff] %vm261_vm1, %v240_v19 }
  0x84   : > { %v248_v20 = vpop.permute.xlu1 %247  ;;  %v246_v21 = vpop.permute.xlu0 %245 }
  0x85   : > { %267 = vst.msk [vmem:[%s543_s19 + $0x28] sm:$0xff] %vm261_vm1, %v248_v20  ;;  %266 = vst.msk [vmem:[%s543_s19 + $0x20] sm:$0xff] %vm261_vm1, %v246_v21 }
  0x88   : > { %v252_v22 = vpop.permute.xlu1 %251 }
  0x89   : > { %269 = vst.msk [vmem:[%s543_s19 + $0x38] sm:$0xff] %vm261_vm1, %v252_v22 }
  0x8b   : > { %v250_v23 = vpop.permute.xlu0 %249 }
  0x8c   : > { %268 = vst.msk [vmem:[%s543_s19 + $0x30] sm:$0xff] %vm261_vm1, %v250_v23 }
  0x8d PF: > { %s12_s13 = sadd.s32 1, %s459_s13   ;;  %s597_s9 = smov %s451_s11 }
  0x8e   : > { %p9_p7 = scmp.ge.s32.totalorder %s12_s13, 8   ;;  %s598_s10 = smov %s455_s12 }
  0x8f   : > { %s599_s11 = smov %s602_s14  ;;  %s600_s12 = smov %s606_s15 }
  0x90   :  { %11 = sbr.rel (!%p9_p7) target bundleno = 3 (0x3), region = 59 }

</bundles_post_ra>
